<compile_context>
chip_gen: v5e
topology: v5e:2x2
jax: 0.10.0
libtpu: 0.0.40
codegen_flags: <defaults>
</compile_context>

<pallas_src>
import functools

import jax
import jax.numpy as jnp
from jax.experimental import pallas as pl
from jax.experimental.pallas import tpu as pltpu

_LANES = 128
_MAX_BLOCK_ROWS = 1024  # 1024x128 f32 = 512 KiB per input per block (2 MiB double-buffered x2 inputs)


def _bce_sum_kernel(p_ref, t_ref, o_ref, *, block_rows, valid_rows, has_partial):
    i = pl.program_id(0)

    @pl.when(i == 0)
    def _():
        o_ref[...] = jnp.zeros_like(o_ref)

    p = p_ref[...].astype(jnp.float32)
    t = t_ref[...].astype(jnp.float32)

    # PyTorch BCELoss clamps the log terms at -100 to avoid inf (and to make
    # the p=1/t=1 padding contribute exactly 0).
    log_p = jnp.maximum(jnp.log(p), jnp.float32(-100.0))
    log_1mp = jnp.maximum(jnp.log(1.0 - p), jnp.float32(-100.0))
    loss = -(t * log_p + (1.0 - t) * log_1mp)

    def accumulate(x):
        # (block_rows, 128) -> (8, 128) with VPU-only adds; the single
        # cross-lane reduction happens once, in the wrapper.
        o_ref[...] += x.reshape(-1, 8, _LANES).sum(axis=0)

    if not has_partial:
        accumulate(loss)
    else:
        # Only reachable when rows > block_rows and the last block overhangs
        # the array (its trailing rows are undefined): mask whole rows, but
        # only on the final grid step.
        is_last = i == pl.num_programs(0) - 1

        @pl.when(jnp.logical_not(is_last))
        def _():
            accumulate(loss)

        @pl.when(is_last)
        def _():
            row = i * block_rows + jax.lax.broadcasted_iota(jnp.int32, loss.shape, 0)
            accumulate(jnp.where(row < valid_rows, loss, jnp.float32(0.0)))


def bce_loss(prediction, target, reduction: str = "mean"):
    """Pallas TPU implementation of nn.BCELoss(reduction=...)(pred.float(), target.float())."""
    # TODO(synk): reduction='none' (pure elementwise map output) not implemented here.
    assert reduction in ("mean", "sum")

    # Keep native dtype (bf16/f16 halves HBM read bytes); math is done in f32 in-kernel.
    p = prediction.reshape(-1)
    t = target.reshape(-1)
    n = p.size
    if n == 0:  # match torch: mean over empty -> nan, sum -> 0
        return jnp.float32(jnp.nan) if reduction == "mean" else jnp.float32(0.0)

    chunk = 8 * _LANES  # 1024 elements: smallest (8, 128)-aligned unit
    n_pad = pl.cdiv(n, chunk) * chunk
    if n_pad != n:
        # Rare path (n % 1024 != 0): pad with p=1, t=1 -> exactly zero loss under
        # the clamp, so no element-level masking is required in the kernel.
        p = jnp.pad(p, (0, n_pad - n), constant_values=1)
        t = jnp.pad(t, (0, n_pad - n), constant_values=1)

    rows = n_pad // _LANES  # multiple of 8
    block_rows = rows if rows <= _MAX_BLOCK_ROWS else _MAX_BLOCK_ROWS
    grid = (pl.cdiv(rows, block_rows),)
    has_partial = (rows % block_rows) != 0  # only possible when rows > _MAX_BLOCK_ROWS

    p2 = p.reshape(rows, _LANES)
    t2 = t.reshape(rows, _LANES)

    kernel = functools.partial(
        _bce_sum_kernel,
        block_rows=block_rows,
        valid_rows=rows,
        has_partial=has_partial,
    )

    partial = pl.pallas_call(
        kernel,
        out_shape=jax.ShapeDtypeStruct((8, _LANES), jnp.float32),
        grid_spec=pltpu.PrefetchScalarGridSpec(
            num_scalar_prefetch=0,
            grid=grid,
            in_specs=[
                pl.BlockSpec((block_rows, _LANES), lambda i: (i, 0)),
                pl.BlockSpec((block_rows, _LANES), lambda i: (i, 0)),
            ],
            # Same block index for every step -> output stays resident in VMEM
            # and acts as the accumulator; written back to HBM once at the end.
            out_specs=pl.BlockSpec((8, _LANES), lambda i: (0, 0)),
        ),
        compiler_params=pltpu.CompilerParams(
            dimension_semantics=("arbitrary",),  # sequential reduction into resident output
        ),
    )(p2, t2)

    # TODO(synk): on v7x, split the reduction over the 2 TensorCores (leading
    # size-2 "parallel" grid axis with per-core partial sums) for up to ~2x;
    # kept single-TC here since v5e/v6e have one TC per chip.
    total = jnp.sum(partial)
    if reduction == "mean":
        return total / jnp.float32(n)
    return total


def _bce_ref(prediction, target, reduction="mean"):
    p = prediction.astype(jnp.float32)
    t = target.astype(jnp.float32)
    log_p = jnp.maximum(jnp.log(p), -100.0)
    log_1mp = jnp.maximum(jnp.log(1.0 - p), -100.0)
    loss = -(t * log_p + (1.0 - t) * log_1mp)
    return jnp.mean(loss) if reduction == "mean" else jnp.sum(loss)


if __name__ == "__main__":
    key = jax.random.PRNGKey(0)
    k1, k2 = jax.random.split(key)

    B, C, H, W = 2, 4, 16, 16  # NCHW, same convention as the PyTorch module
    prediction = jax.nn.sigmoid(jax.random.normal(k1, (B, C, H, W), dtype=jnp.float32))
    target = (jax.random.uniform(k2, (B, C, H, W)) > 0.5).astype(jnp.float32)

    out = bce_loss(prediction, target, reduction="mean")
    out = jax.block_until_ready(out)

    ref = _bce_ref(prediction, target, reduction="mean")
    assert jnp.allclose(out, ref, atol=1e-5, rtol=1e-5), (out, ref)

    print("KERNEL_OK")
</pallas_src>

<mosaic_0001>
module attributes {stable_mosaic.version = 11 : i64} {
  func.func @_bce_sum_kernel(%arg0: i32, %arg1: memref<16x128xf32, #tpu.memory_space<vmem>>, %arg2: memref<16x128xf32, #tpu.memory_space<vmem>>, %arg3: memref<8x128xf32, #tpu.memory_space<vmem>>) attributes {dimension_semantics = [#tpu.dimension_semantics<arbitrary>], iteration_bounds = array<i64: 1>, scalar_prefetch = 0 : i64, scratch_operands = 0 : i64, tpu.core_type = #tpu.core_type<tc>, window_params = [{transform_indices = @transform_0, window_bounds = array<i64: 16, 128>}, {transform_indices = @transform_1, window_bounds = array<i64: 16, 128>}, {pipeline_mode = #tpu.pipeline_mode<synchronous>, transform_indices = @transform_2, window_bounds = array<i64: 8, 128>}]} {
    %c0_i32 = arith.constant 0 : i32
    %0 = arith.cmpi eq, %arg0, %c0_i32 : i32
    %1 = arith.extui %0 : i1 to i32
    %c0_i32_0 = arith.constant 0 : i32
    %2 = arith.cmpi ne, %1, %c0_i32_0 : i32
    scf.if %2 {
      %cst_13 = arith.constant 0.000000e+00 : f32
      %25 = vector.broadcast %cst_13 : f32 to vector<8x128xf32>
      %c0_14 = arith.constant 0 : index
      %c0_15 = arith.constant 0 : index
      %26 = vector.load %arg3[%c0_14, %c0_15] : memref<8x128xf32, #tpu.memory_space<vmem>>, vector<8x128xf32>
      tpu.vector_store %arg3[%c0_14, %c0_15], %25 {strides = array<i32>} : memref<8x128xf32, #tpu.memory_space<vmem>>, vector<8x128xf32>,
    } else {
    }
    %c0 = arith.constant 0 : index
    %c0_1 = arith.constant 0 : index
    %3 = vector.load %arg1[%c0, %c0_1] : memref<16x128xf32, #tpu.memory_space<vmem>>, vector<16x128xf32>
    %c0_2 = arith.constant 0 : index
    %c0_3 = arith.constant 0 : index
    %4 = vector.load %arg2[%c0_2, %c0_3] : memref<16x128xf32, #tpu.memory_space<vmem>>, vector<16x128xf32>
    %5 = math.log %3 : vector<16x128xf32>
    %cst = arith.constant -1.000000e+02 : f32
    %6 = vector.broadcast %cst : f32 to vector<16x128xf32>
    %7 = arith.maximumf %5, %6 : vector<16x128xf32>
    %cst_4 = arith.constant 1.000000e+00 : f32
    %8 = vector.broadcast %cst_4 : f32 to vector<16x128xf32>
    %9 = arith.subf %8, %3 : vector<16x128xf32>
    %10 = math.log %9 : vector<16x128xf32>
    %cst_5 = arith.constant -1.000000e+02 : f32
    %11 = vector.broadcast %cst_5 : f32 to vector<16x128xf32>
    %12 = arith.maximumf %10, %11 : vector<16x128xf32>
    %13 = arith.mulf %4, %7 : vector<16x128xf32>
    %cst_6 = arith.constant 1.000000e+00 : f32
    %14 = vector.broadcast %cst_6 : f32 to vector<16x128xf32>
    %15 = arith.subf %14, %4 : vector<16x128xf32>
    %16 = arith.mulf %15, %12 : vector<16x128xf32>
    %17 = arith.addf %13, %16 : vector<16x128xf32>
    %cst_7 = arith.constant 0.000000e+00 : f32
    %18 = vector.broadcast %cst_7 : f32 to vector<16x128xf32>
    %19 = arith.subf %18, %17 : vector<16x128xf32>
    %c0_8 = arith.constant 0 : index
    %c0_9 = arith.constant 0 : index
    %20 = vector.load %arg3[%c0_8, %c0_9] : memref<8x128xf32, #tpu.memory_space<vmem>>, vector<8x128xf32>
    %21 = vector.shape_cast %19 : vector<16x128xf32> to vector<2x8x128xf32>
    %cst_10 = arith.constant dense<0.000000e+00> : vector<8x128xf32>
    %22 = vector.multi_reduction <add>, %21, %cst_10 [0] : vector<2x8x128xf32> to vector<8x128xf32>
    %23 = arith.addf %20, %22 : vector<8x128xf32>
    %c0_11 = arith.constant 0 : index
    %c0_12 = arith.constant 0 : index
    %24 = vector.load %arg3[%c0_11, %c0_12] : memref<8x128xf32, #tpu.memory_space<vmem>>, vector<8x128xf32>
    tpu.vector_store %arg3[%c0_11, %c0_12], %23 {strides = array<i32>} : memref<8x128xf32, #tpu.memory_space<vmem>>, vector<8x128xf32>,
    return
  }
  func.func @transform_0(%arg0: i32) -> (i32, i32) {
    %c0_i32 = arith.constant 0 : i32
    %c0_i32_0 = arith.constant 0 : i32
    return %arg0, %c0_i32 : i32, i32
  }
  func.func @transform_1(%arg0: i32) -> (i32, i32) {
    %c0_i32 = arith.constant 0 : i32
    %c0_i32_0 = arith.constant 0 : i32
    return %arg0, %c0_i32 : i32, i32
  }
  func.func @transform_2(%arg0: i32) -> (i32, i32) {
    %c0_i32 = arith.constant 0 : i32
    %c0_i32_0 = arith.constant 0 : i32
    %c0_i32_1 = arith.constant 0 : i32
    return %c0_i32, %c0_i32_0 : i32, i32
  }
}

</mosaic_0001>

<bundles_post_ra>
// kernel: tpu_custom_call.1
= control target key start
LH: loop header
LB: loop body
LE: loop exit
PB: predicated region body
PF: predicated region fallthrough
CT: control target
= control target key end

     0   :  { %7 = vsyncpa [#allocation3], 0  ;;  %s220_s0 = inlined_call_operand.hbm [shape: f32[16,128], index: 0, kind: input, shape index: {}]   ;;  %s221_s1 = inlined_call_operand.hbm [shape: f32[16,128], index: 1, kind: input, shape index: {}]   ;;  %s222_s2 = inlined_call_operand.hbm [shape: f32[8,128], index: 2, kind: output, shape index: {}]  }
   0x1   :  { %8 = vsyncpa [#allocation6], 0 }
   0x2   :  { %9 = vsyncpa [#allocation4], 0  ;;  %s14_s11 = sshll.u32 %s220_s0, 4  ;;  %s191_s12 = smov [#allocation2]   ;;  %s15_s11 = int_to_ptr.hbm [resolvable:$true] %s14_s11 }
   0x3   :  { %s16_s13 = sshll.u32 %s191_s12, 4  ;;  %s27_s16 = sshll.u32 %s221_s1, 4  ;;  %s17_s13 = int_to_ptr.vmem [resolvable:$true] %s16_s13  ;;  %s28_s16 = int_to_ptr.hbm [resolvable:$true] %s27_s16 }
   0x4   :  { %s192_s17 = smov 128   ;;  %s193_s18 = smov 8  }
   0x5   :  { %22 = dma.hbm_to_vmem [thread:$0]  %s15_s11, 256, %s17_s13, [#allocation3], %s192_s17, %s192_s17, %s193_s18  }
   0x6   :  { %s194_s19 = smov [#allocation5]  }
   0x7   :  { %s29_s20 = sshll.u32 %s194_s19, 4  ;;  %s30_s20 = int_to_ptr.vmem [resolvable:$true] %s29_s20 }
   0x8   :  { %35 = dma.hbm_to_vmem [thread:$0]  %s28_s16, 256, %s30_s20, [#allocation6], %s192_s17, %s192_s17, %s193_s18  }
   0x9   :  { %185 = dma.done.wait [#allocation3], 256  }
   0xa   :  { %186 = vsyncadd [#allocation3], 4294967040 }
   0xb   :  { %187 = dma.done.wait [#allocation6], 256  }
   0xc   :  { %188 = vsyncadd [#allocation6], 4294967040  ;;  %v49_v0 = vld [vmem:[#allocation2] sm:$0xff]  ;;  %v50_v1 = vld [vmem:[#allocation2 + $0x8] sm:$0xff]  ;;  %s195_s0 = smov [#allocation7]   ;;  %s88_s23 = sshll.u32 %s222_s2, 4  ;;  %s89_s23 = int_to_ptr.hbm [resolvable:$true] %s88_s23 }
   0xd   :  { %105 = vlog2.f32 %v49_v0  ;;  %v59_v2 = vsub.f32 1.0, %v49_v0  ;;  %v60_v3 = vsub.f32 1.0, %v50_v1  ;;  %v51_v5 = vld [vmem:[#allocation5] sm:$0xff]  ;;  %v52_v7 = vld [vmem:[#allocation5 + $0x8] sm:$0xff]  ;;  %s86_s1 = sshll.u32 %s195_s0, 4  ;;  %s87_s1 = int_to_ptr.vmem [resolvable:$true] %s86_s1 }
   0xe   :  { %107 = vlog2.f32 %v50_v1  ;;  %v69_v14 = vsub.f32 1.0, %v51_v5  ;;  %v70_v17 = vsub.f32 1.0, %v52_v7 }
   0xf   :  { %109 = vlog2.f32 %v59_v2 }
  0x10   :  { %111 = vlog2.f32 %v60_v3 }
  0x13   :  { %v106_v4 = vpop.eup %105 }
  0x14   :  { %v108_v6 = vpop.eup %107  ;;  %v54_v8 = vmul.f32 0.6931472, %v106_v4 }
  0x15   :  { %v110_v9 = vpop.eup %109  ;;  %v56_v10 = vmul.f32 0.6931472, %v108_v6 }
  0x16   :  { %v112_v11 = vpop.eup %111  ;;  %v57_v12 = vmax.f32 %v54_v8, -100.0  ;;  %v62_v13 = vmul.f32 0.6931472, %v110_v9 }
  0x17   :  { %v58_v15 = vmax.f32 %v56_v10, -100.0  ;;  %v64_v16 = vmul.f32 0.6931472, %v112_v11 }
  0x18   :  { %v65_v18 = vmax.f32 %v62_v13, -100.0  ;;  %v67_v19 = vmul.f32 %v57_v12, %v51_v5 }
  0x19   :  { %v66_v20 = vmax.f32 %v64_v16, -100.0  ;;  %v68_v21 = vmul.f32 %v58_v15, %v52_v7 }
  0x1a   :  { %v71_v22 = vmul.f32 %v69_v14, %v65_v18 }
  0x1b   :  { %v72_v23 = vmul.f32 %v70_v17, %v66_v20 }
  0x1c   :  { %v73_v24 = vadd.f32 %v71_v22, %v67_v19 }
  0x1d   :  { %v74_v25 = vadd.f32 %v72_v23, %v68_v21 }
  0x1e   :  { %v75_v26 = vsub.f32 0.0, %v73_v24 }
  0x1f   :  { %v76_v27 = vsub.f32 0.0, %v74_v25 }
  0x21   :  { %v78_v28 = vadd.f32 %v76_v27, %v75_v26 }
  0x23   :  { %80 = vst [vmem:[#allocation7] sm:$0xff] %v78_v28 }
  0x24   :  { %91 = dma.vmem_to_hbm [thread:$0]  %s87_s1, 128, %s89_s23, [#allocation4]  }
  0x25   :  { %189 = dma.done.wait [#allocation4], 128  }
  0x26   :  { %190 = vsyncadd [#allocation4], 4294967168 }
  0x27   :  { %96 = vsyncpa [#allocation3], 1 }
  0x28   :  { %97 = vsyncpa [#allocation6], 1 }
  0x29   :  { %98 = vsyncpa [#allocation4], 1 }

</bundles_post_ra>
